<compile_context>
chip_gen: v7x
topology: tpu7x:2x2x1
jax: 0.10.0
libtpu: 0.0.40
codegen_flags: <defaults>
</compile_context>

<pallas_src>
import jax
import jax.numpy as jnp
from jax.experimental import pallas as pl
from jax.experimental.pallas import tpu as pltpu

_BLOCK_BUDGET = 6 * 1024 * 1024      # ~6 MiB per output block (1 B/elem)
_VMEM_LIMIT = 32 * 1024 * 1024       # explicit scoped-VMEM headroom, safe on all chips


def _timestep_kernel(src_ref, out_ref):
    """src: (1, L) int8 0/1 pattern; out: (tm, L) — broadcast over rows, store bool."""
    vals = jnp.broadcast_to(src_ref[...], out_ref.shape)
    out_ref[...] = (vals != 0).astype(out_ref.dtype)


def _neuron_kernel(src_ref, out_ref):
    """src: (1, tn, W) int8; out: (1, tn, T) with T a multiple of W — lane-replicate."""
    vals = src_ref[...]
    reps = out_ref.shape[-1] // vals.shape[-1]
    if reps > 1:
        vals = jnp.concatenate([vals] * reps, axis=-1)
    out_ref[...] = (vals != 0).astype(out_ref.dtype)


def _pick_block_rows(rows, row_bytes, budget_bytes=_BLOCK_BUDGET):
    """Largest multiple-of-32 row tile within the VMEM budget (1-byte elements)."""
    fit = max(1, budget_bytes // max(row_bytes, 1))
    if fit >= 32:
        max_rows = (fit // 32) * 32
    else:
        max_rows = max(8, (fit // 8) * 8)  # extremely wide rows: 8-sublane floor
    tm = min(rows, max_rows)
    # If everything fits in one block, split once so both v7x TensorCores get work.
    if tm == rows and rows >= 64:
        tm = -(-(rows // 2) // 32) * 32
    return max(1, tm)


def _pick_group(rows_total, t, lane_target=1024, max_width=8192):
    """Group g identical rows into one wide row of length g*t.

    Prefer the smallest divisor g of rows_total making g*t a multiple of 128
    (unmasked lane-dense stores) and >= lane_target; otherwise the widest
    divisor with g*t <= lane_target (still widens masked stores).
    """
    best_aligned = 0
    best_any = 1
    limit = max(1, max_width // max(t, 1))
    for g in range(1, limit + 1):
        if rows_total % g:
            continue
        if (g * t) % 128 == 0:
            best_aligned = g
            if g * t >= lane_target:
                break
        elif g * t <= lane_target:
            best_any = g
    return best_aligned if best_aligned else best_any


def masker(x, key, *, mask_mode="timestep", mask_ratio=0.2):
    """Pallas equivalent of Masker.forward(X): bool mask of x.shape."""
    assert x.ndim == 3
    assert mask_mode in ("timestep", "neuron")
    B, N, T = (int(d) for d in x.shape)
    ratio = jnp.float32(mask_ratio)

    if mask_mode == "timestep":
        # torch.rand(1, 1, T) < ratio, expanded over (B, N).
        pattern = (jax.random.uniform(key, (1, T), dtype=jnp.float32) < ratio)
        pattern = pattern.astype(jnp.int8)                      # (1, T), tiny
        g = _pick_group(B * N, T)
        L, R = g * T, (B * N) // g
        src = jnp.tile(pattern, (1, g)) if g > 1 else pattern   # (1, L) int8
        tm = _pick_block_rows(R, L)

        def run(out_dtype):
            out = pl.pallas_call(
                _timestep_kernel,
                out_shape=jax.ShapeDtypeStruct((R, L), out_dtype),
                grid=(pl.cdiv(R, tm),),
                in_specs=[pl.BlockSpec((1, L), lambda i: (0, 0))],
                out_specs=pl.BlockSpec((tm, L), lambda i: (i, 0)),
                compiler_params=pltpu.CompilerParams(
                    dimension_semantics=("parallel",),
                    vmem_limit_bytes=_VMEM_LIMIT),
            )(src)
            return out.reshape(B, N, T)       # row-major reshape: layout no-op

    else:
        # torch.rand(1, N, 1) < ratio, expanded over (B, T).
        col = jax.random.uniform(key, (1, N, 1), dtype=jnp.float32) < ratio
        W = 128 if (T % 128 == 0 and T >= 128) else T
        src = jnp.broadcast_to(col, (1, N, W)).astype(jnp.int8)   # (1, N, W), N*W bytes
        tn = _pick_block_rows(N, T)
        n_steps = pl.cdiv(N, tn)

        def run(out_dtype):
            return pl.pallas_call(
                _neuron_kernel,
                out_shape=jax.ShapeDtypeStruct((B, N, T), out_dtype),
                # Batch innermost: the src block index only changes with n, so the
                # slab is DMA'd once per N-tile instead of once per (n, b) step.
                grid=(n_steps, B),
                in_specs=[pl.BlockSpec((1, tn, W), lambda n, b: (0, n, 0))],
                out_specs=pl.BlockSpec((1, tn, T), lambda n, b: (b, n, 0)),
                compiler_params=pltpu.CompilerParams(
                    dimension_semantics=("parallel", "parallel"),
                    vmem_limit_bytes=_VMEM_LIMIT),
            )(src)

    try:
        return run(jnp.bool_)                 # fused: single store pass, final dtype
    except Exception:
        # TODO(synk): drop once bool VMEM stores are supported everywhere; this
        # fallback re-adds one elementwise HBM pass versus the fused bool path.
        return run(jnp.int8).astype(jnp.bool_)


def _check(x, key_t, key_n, ratio=0.2):
    B, N, T = x.shape
    mask_t = masker(x, key_t, mask_mode="timestep", mask_ratio=ratio)
    mask_n = masker(x, key_n, mask_mode="neuron", mask_ratio=ratio)
    jax.block_until_ready((mask_t, mask_n))

    assert mask_t.shape == x.shape and mask_t.dtype == jnp.bool_
    assert mask_n.shape == x.shape and mask_n.dtype == jnp.bool_

    # Exact parity with a pure-JAX reference built from the same key draws.
    ref_t = jnp.broadcast_to(
        (jax.random.uniform(key_t, (1, T), dtype=jnp.float32) < ratio)[:, None, :],
        x.shape)
    ref_n = jnp.broadcast_to(
        jax.random.uniform(key_n, (1, N, 1), dtype=jnp.float32) < ratio, x.shape)
    assert bool(jnp.all(mask_t == ref_t))
    assert bool(jnp.all(mask_n == ref_n))

    # Broadcast structure: timestep mask constant over (B, N); neuron over (B, T).
    assert bool(jnp.all(mask_t == mask_t[0:1, 0:1, :]))
    assert bool(jnp.all(mask_n == mask_n[0:1, :, 0:1]))


if __name__ == "__main__":
    key = jax.random.PRNGKey(0)
    kx1, kt1, kn1, kx2, kt2, kn2 = jax.random.split(key, 6)

    # Lane-aligned case: T = 128.
    x1 = jax.random.normal(kx1, (2, 32, 128), dtype=jnp.float32)
    _check(x1, kt1, kn1)

    # Non-128-multiple T exercises the widened / masked-store paths.
    x2 = jax.random.normal(kx2, (2, 48, 96), dtype=jnp.float32)
    _check(x2, kt2, kn2)

    print("KERNEL_OK")
</pallas_src>

<mosaic_0001>
module attributes {stable_mosaic.version = 11 : i64} {
  func.func @_timestep_kernel(%arg0: i32, %arg1: memref<1x1024xi8, #tpu.memory_space<vmem>>, %arg2: memref<8x1024xi32, #tpu.memory_space<vmem>>) attributes {dimension_semantics = [#tpu.dimension_semantics<parallel>], iteration_bounds = array<i64: 1>, scalar_prefetch = 0 : i64, scratch_operands = 0 : i64, tpu.core_type = #tpu.core_type<tc>, window_params = [{pipeline_mode = #tpu.pipeline_mode<synchronous>, transform_indices = @transform_0, window_bounds = array<i64: 1, 1024>}, {transform_indices = @transform_1, window_bounds = array<i64: 8, 1024>}]} {
    %c0 = arith.constant 0 : index
    %c0_0 = arith.constant 0 : index
    %0 = vector.load %arg1[%c0, %c0_0] : memref<1x1024xi8, #tpu.memory_space<vmem>>, vector<1x1024xi8>
    %1 = vector.shape_cast %0 : vector<1x1024xi8> to vector<1x1024xi8>
    %2 = vector.broadcast %1 : vector<1x1024xi8> to vector<8x1024xi8>
    %c0_i8 = arith.constant 0 : i8
    %3 = vector.broadcast %c0_i8 : i8 to vector<8x1024xi8>
    %4 = arith.cmpi ne, %2, %3 : vector<8x1024xi8>
    %c0_1 = arith.constant 0 : index
    %c0_2 = arith.constant 0 : index
    %5 = vector.load %arg2[%c0_1, %c0_2] : memref<8x1024xi32, #tpu.memory_space<vmem>>, vector<8x1024xi32>
    %6 = arith.extui %4 : vector<8x1024xi1> to vector<8x1024xi32>
    %cst = arith.constant dense<0> : vector<8x1024xi32>
    %7 = arith.cmpi ne, %5, %cst : vector<8x1024xi32>
    tpu.vector_store %arg2[%c0_1, %c0_2], %6 {strides = array<i32>} : memref<8x1024xi32, #tpu.memory_space<vmem>>, vector<8x1024xi32>,
    return
  }
  func.func @transform_0(%arg0: i32) -> (i32, i32) {
    %c0_i32 = arith.constant 0 : i32
    %c0_i32_0 = arith.constant 0 : i32
    %c0_i32_1 = arith.constant 0 : i32
    return %c0_i32, %c0_i32_0 : i32, i32
  }
  func.func @transform_1(%arg0: i32) -> (i32, i32) {
    %c0_i32 = arith.constant 0 : i32
    %c0_i32_0 = arith.constant 0 : i32
    return %arg0, %c0_i32 : i32, i32
  }
}

module attributes {stable_mosaic.version = 11 : i64} {
  func.func @_timestep_kernel(%arg0: i32, %arg1: memref<1x1024xi8, #tpu.memory_space<vmem>>, %arg2: memref<8x1024xi8, #tpu.memory_space<vmem>>) attributes {dimension_semantics = [#tpu.dimension_semantics<parallel>], iteration_bounds = array<i64: 1>, scalar_prefetch = 0 : i64, scratch_operands = 0 : i64, tpu.core_type = #tpu.core_type<tc>, window_params = [{pipeline_mode = #tpu.pipeline_mode<synchronous>, transform_indices = @transform_0, window_bounds = array<i64: 1, 1024>}, {transform_indices = @transform_1, window_bounds = array<i64: 8, 1024>}]} {
    %c0 = arith.constant 0 : index
    %c0_0 = arith.constant 0 : index
    %0 = vector.load %arg1[%c0, %c0_0] : memref<1x1024xi8, #tpu.memory_space<vmem>>, vector<1x1024xi8>
    %1 = vector.shape_cast %0 : vector<1x1024xi8> to vector<1x1024xi8>
    %2 = vector.broadcast %1 : vector<1x1024xi8> to vector<8x1024xi8>
    %c0_i8 = arith.constant 0 : i8
    %3 = vector.broadcast %c0_i8 : i8 to vector<8x1024xi8>
    %4 = arith.cmpi ne, %2, %3 : vector<8x1024xi8>
    %5 = arith.extui %4 : vector<8x1024xi1> to vector<8x1024xi8>
    %c0_1 = arith.constant 0 : index
    %c0_2 = arith.constant 0 : index
    %6 = vector.load %arg2[%c0_1, %c0_2] : memref<8x1024xi8, #tpu.memory_space<vmem>>, vector<8x1024xi8>
    tpu.vector_store %arg2[%c0_1, %c0_2], %5 {strides = array<i32>} : memref<8x1024xi8, #tpu.memory_space<vmem>>, vector<8x1024xi8>,
    return
  }
  func.func @transform_0(%arg0: i32) -> (i32, i32) {
    %c0_i32 = arith.constant 0 : i32
    %c0_i32_0 = arith.constant 0 : i32
    %c0_i32_1 = arith.constant 0 : i32
    return %c0_i32, %c0_i32_0 : i32, i32
  }
  func.func @transform_1(%arg0: i32) -> (i32, i32) {
    %c0_i32 = arith.constant 0 : i32
    %c0_i32_0 = arith.constant 0 : i32
    return %arg0, %c0_i32 : i32, i32
  }
}

</mosaic_0001>

<bundles_post_ra>
// kernel: tpu_custom_call.1
= control target key start
LH: loop header
LB: loop body
LE: loop exit
PB: predicated region body
PF: predicated region fallthrough
CT: control target
= control target key end

     0   :  { %6 = vsyncpa [#allocation3], 0  ;;  %s227_s6 = smov [#allocation2]   ;;  %s294_s0 = inlined_call_operand.hbm [shape: s8[1,1024], index: 0, kind: input, shape index: {}]   ;;  %s295_s1 = inlined_call_operand.vmem [shape: s32[8,1024], index: 1, kind: output, shape index: {}]  }
   0x1   :  { %s13_s7 = sshll.u32 %s227_s6, 4  ;;  %s203_s10 = scalar_lea.hbm %s294_s0, 128  ;;  %s14_s7 = int_to_ptr.vmem [resolvable:$true] %s13_s7 }
   0x2   :  { %p204_p0 = scmp.ne.s32.totalorder %s294_s0, %s203_s10  ;;  %p207_p1 = scmp.lt.u32.totalorder %s203_s10, %s294_s0 }
   0x4   :  { %p209_p2 = pnand %p207_p1, %p204_p0 }
   0x6   :  { %212 = shalt.err (!%p209_p2)
}
   0x7   :  { %s213_s15 = scalar_lea.vmem %s14_s7, 128  ;;  %p218_p4 = scmp.lt.s32.totalorder %s14_s7, %s14_s7 }
   0x8   :  { %p214_p3 = scmp.ne.s32.totalorder %s14_s7, %s213_s15  ;;  %p219_p5 = scmp.lt.s32.totalorder %s213_s15, %s213_s15 }
   0xa   :  { %p220_p6 = por %p219_p5, %p218_p4 }
   0xc   :  { %p221_p7 = pnand %p220_p6, %p214_p3 }
   0xe   :  { %224 = shalt.err (!%p221_p7)
}
   0xf   :  { %16 = dma.hbm_to_vmem [thread:$0]  %s294_s0, 128, %s14_s7, [#allocation3]  }
  0x10   :  { %225 = dma.done.wait [#allocation3], 128  }
  0x11   :  { %226 = vsyncadd [#allocation3], 4294967168  ;;  %v27_v0 = vlaneseq  ;;  %v228_v1 = vmov 1966171168   ;;  %v22_v6 = vld [vmem:[#allocation2] sm:$0xff]  ;;  %v229_v36 = vmov 0  }
  0x12   :  { %v25_v2 = vunpack.c.l.s4 %v228_v1  ;;  %v23_v8 = vcombine.high %v22_v6, %v22_v6 }
  0x13   :  { %v28_v3 = vshrl.u32 %v27_v0, 7 }
  0x14   :  { %v26_v4 = vunpack.c.0.s8 %v25_v2 }
  0x15   :  { %v77_v12 = vsub.s32 0, %v28_v3 }
  0x16   :  { %v29_v5 = vsub.s32 %v26_v4, %v28_v3 }
  0x18   :  { %v30_v7 = vrot.slane %v22_v6, %v29_v5  ;;  %v37_v11 = vrot.slane %v23_v8, %v29_v5 }
  0x1a   :  { %v38_v9 = vcombine.high %v30_v7, %v30_v7  ;;  %v46_v10 = vrot.slane %v30_v7, %v29_v5  ;;  %v39_v16 = vcombine.high %v37_v11, %v37_v11  ;;  %v53_v17 = vrot.slane %v37_v11, %v29_v5 }
  0x1c   :  { %v60_v13 = vrot.slane %v38_v9, %v29_v5  ;;  %v68_v14 = vcombine.high %v46_v10, %v46_v10  ;;  %v73_v15 = vpack.i.b16 %v46_v10, %v46_v10  ;;  %v67_v22 = vrot.slane %v39_v16, %v29_v5 }
  0x1d   :  { %v69_v23 = vcombine.high %v53_v17, %v53_v17  ;;  %v101_v24 = vpack.i.b16 %v53_v17, %v53_v17 }
  0x1e   :  { %v70_v18 = vcombine.high %v60_v13, %v60_v13  ;;  %v74_v19 = vpack.i.b8 %v73_v15, %v73_v15  ;;  %v80_v20 = vpack.i.b16 %v60_v13, %v60_v13  ;;  %v87_v21 = vpack.i.b16 %v68_v14, %v68_v14 }
  0x1f   :  { %v71_v29 = vcombine.high %v67_v22, %v67_v22  ;;  %v102_v30 = vpack.i.b8 %v101_v24, %v101_v24  ;;  %v108_v31 = vpack.i.b16 %v67_v22, %v67_v22  ;;  %v115_v32 = vpack.i.b16 %v69_v23, %v69_v23 }
  0x20   :  { %v78_v25 = vrot.slane %v74_v19, %v77_v12  ;;  %v81_v26 = vpack.i.b8 %v80_v20, %v80_v20  ;;  %v88_v27 = vpack.i.b8 %v87_v21, %v87_v21  ;;  %v94_v28 = vpack.i.b16 %v70_v18, %v70_v18 }
  0x21   :  { %v106_v38 = vrot.slane %v102_v30, %v77_v12  ;;  %v109_v39 = vpack.i.b8 %v108_v31, %v108_v31  ;;  %v116_v40 = vpack.i.b8 %v115_v32, %v115_v32  ;;  %v122_v49 = vpack.i.b16 %v71_v29, %v71_v29 }
  0x22   :  { %v85_v33 = vrot.slane %v81_v26, %v77_v12  ;;  %v92_v34 = vrot.slane %v88_v27, %v77_v12  ;;  %v95_v35 = vpack.i.b8 %v94_v28, %v94_v28  ;;  %vm128_vm0 = vnez %v78_v25 }
  0x23   :  { %v136_v37 = vsel %vm128_vm0, 16843009, %v229_v36  ;;  %v113_v45 = vrot.slane %v109_v39, %v77_v12  ;;  %v120_v46 = vrot.slane %v116_v40, %v77_v12  ;;  %vm132_vm4 = vnez %v106_v38 }
  0x24   :  { %v99_v41 = vrot.slane %v95_v35, %v77_v12  ;;  %vm129_vm1 = vnez %v85_v33  ;;  %vm130_vm2 = vnez %v92_v34  ;;  %v144_v42 = vunpack.c.0.s8 %v136_v37 }
  0x25   :  { %v137_v43 = vsel %vm129_vm1, 16843009, %v229_v36  ;;  %v138_v44 = vsel %vm130_vm2, 16843009, %v229_v36  ;;  %vm133_vm5 = vnez %v113_v45  ;;  %vm134_vm6 = vnez %v120_v46 }
  0x26   :  { %vm131_vm3 = vnez %v99_v41  ;;  %v145_v47 = vunpack.c.0.s8 %v137_v43  ;;  %v146_v48 = vunpack.c.0.s8 %v138_v44  ;;  %v123_v53 = vpack.i.b8 %v122_v49, %v122_v49 }
  0x27   :  { %v139_v50 = vsel %vm131_vm3, 16843009, %v229_v36  ;;  %v140_v54 = vsel %vm132_vm4, 16843009, %v229_v36  ;;  %v141_v55 = vsel %vm133_vm5, 16843009, %v229_v36 }
  0x28   :  { %v147_v51 = vunpack.c.0.s8 %v139_v50  ;;  %v152_v52 = vpack.c.b16 %v145_v47, %v144_v42  ;;  %v127_v57 = vrot.slane %v123_v53, %v77_v12  ;;  %v142_v58 = vsel %vm134_vm6, 16843009, %v229_v36 }
  0x29   :  { %v148_v59 = vunpack.c.0.s8 %v140_v54  ;;  %v149_v60 = vunpack.c.0.s8 %v141_v55  ;;  %v150_v63 = vunpack.c.0.s8 %v142_v58 }
  0x2a   :  { %v153_v56 = vpack.c.b16 %v147_v51, %v146_v48  ;;  %vm135_vm7 = vnez %v127_v57 }
  0x2b   :  { %v143_v62 = vsel %vm135_vm7, 16843009, %v229_v36  ;;  %v155_v2 = vpack.c.b16 %v149_v60, %v148_v59 }
  0x2c   :  { %v154_v61 = vpack.c.b8 %v153_v56, %v152_v52  ;;  %v151_v0 = vunpack.c.0.s8 %v143_v62 }
  0x2e   :  { %vm158_vm8 = vnez %v154_v61  ;;  %v156_v7 = vpack.c.b16 %v151_v0, %v150_v63 }
  0x2f   :  { %v160_v1 = vsel %vm158_vm8, 16843009, %v229_v36 }
  0x30   :  { %v162_v3 = vunpack.c.0.s8 %v160_v1  ;;  %v163_v4 = vunpack.c.1.s8 %v160_v1  ;;  %v164_v5 = vunpack.c.2.s8 %v160_v1  ;;  %v165_v6 = vunpack.c.3.s8 %v160_v1 }
  0x31   :  { %v157_v12 = vpack.c.b8 %v156_v7, %v155_v2 }
  0x32   :  { %vm170_vm9 = vcmp.ne.s32.totalorder %v162_v3, 0  ;;  %vm171_vm10 = vcmp.ne.s32.totalorder %v163_v4, 0  ;;  %vm172_vm11 = vcmp.ne.s32.totalorder %v164_v5, 0  ;;  %vm173_vm12 = vcmp.ne.s32.totalorder %v165_v6, 0 }
  0x33   :  { %v178_v8 = vsel %vm170_vm9, 1, %v229_v36  ;;  %v179_v9 = vsel %vm171_vm10, 1, %v229_v36  ;;  %v180_v10 = vsel %vm172_vm11, 1, %v229_v36  ;;  %v181_v11 = vsel %vm173_vm12, 1, %v229_v36 }
  0x34   :  { %186 = vst [vmem:[%s295_s1] sm:$0xff] %v178_v8  ;;  %187 = vst [vmem:[%s295_s1 + $0x8] sm:$0xff] %v179_v9  ;;  %vm159_vm13 = vnez %v157_v12 }
  0x35   :  { %188 = vst [vmem:[%s295_s1 + $0x10] sm:$0xff] %v180_v10  ;;  %189 = vst [vmem:[%s295_s1 + $0x18] sm:$0xff] %v181_v11  ;;  %v161_v13 = vsel %vm159_vm13, 16843009, %v229_v36 }
  0x36   :  { %v166_v14 = vunpack.c.0.s8 %v161_v13  ;;  %v167_v15 = vunpack.c.1.s8 %v161_v13  ;;  %v168_v16 = vunpack.c.2.s8 %v161_v13  ;;  %v169_v17 = vunpack.c.3.s8 %v161_v13 }
  0x38   :  { %vm174_vm14 = vcmp.ne.s32.totalorder %v166_v14, 0  ;;  %vm175_vm15 = vcmp.ne.s32.totalorder %v167_v15, 0  ;;  %vm176_vm0 = vcmp.ne.s32.totalorder %v168_v16, 0  ;;  %vm177_vm1 = vcmp.ne.s32.totalorder %v169_v17, 0 }
  0x39   :  { %v182_v18 = vsel %vm174_vm14, 1, %v229_v36  ;;  %v183_v19 = vsel %vm175_vm15, 1, %v229_v36  ;;  %v184_v20 = vsel %vm176_vm0, 1, %v229_v36  ;;  %v185_v21 = vsel %vm177_vm1, 1, %v229_v36 }
  0x3a   :  { %190 = vst [vmem:[%s295_s1 + $0x20] sm:$0xff] %v182_v18  ;;  %191 = vst [vmem:[%s295_s1 + $0x28] sm:$0xff] %v183_v19 }
  0x3b   :  { %192 = vst [vmem:[%s295_s1 + $0x30] sm:$0xff] %v184_v20  ;;  %193 = vst [vmem:[%s295_s1 + $0x38] sm:$0xff] %v185_v21 }
  0x3c   :  { %198 = vsyncpa [#allocation3], 1 }

// kernel: tpu_custom_call.1
= control target key start
LH: loop header
LB: loop body
LE: loop exit
PB: predicated region body
PF: predicated region fallthrough
CT: control target
= control target key end

     0   :  { %6 = vsyncpa [#allocation3], 0  ;;  %s267_s0 = inlined_call_operand.hbm [shape: s8[1,1024], index: 0, kind: input, shape index: {}]   ;;  %s268_s1 = inlined_call_operand.hbm [shape: s8[8,1024], index: 1, kind: output, shape index: {}]  }
   0x1   :  { %7 = vsyncpa [#allocation4], 0  ;;  %s229_s6 = smov [#allocation2]   ;;  %s181_s10 = scalar_lea.hbm %s267_s0, 128 }
   0x2   :  { %s14_s7 = sshll.u32 %s229_s6, 4  ;;  %p182_p0 = scmp.ne.s32.totalorder %s267_s0, %s181_s10  ;;  %s15_s7 = int_to_ptr.vmem [resolvable:$true] %s14_s7 }
   0x3   :  { %p185_p1 = scmp.lt.u32.totalorder %s181_s10, %s267_s0 }
   0x5   :  { %p187_p2 = pnand %p185_p1, %p182_p0 }
   0x7   :  { %190 = shalt.err (!%p187_p2)
}
   0x8   :  { %s191_s15 = scalar_lea.vmem %s15_s7, 128  ;;  %p196_p4 = scmp.lt.s32.totalorder %s15_s7, %s15_s7 }
   0x9   :  { %p192_p3 = scmp.ne.s32.totalorder %s15_s7, %s191_s15  ;;  %p197_p5 = scmp.lt.s32.totalorder %s191_s15, %s191_s15 }
   0xb   :  { %p198_p6 = por %p197_p5, %p196_p4 }
   0xd   :  { %p199_p7 = pnand %p198_p6, %p192_p3 }
   0xf   :  { %202 = shalt.err (!%p199_p7)
}
  0x10   :  { %17 = dma.hbm_to_vmem [thread:$0]  %s267_s0, 128, %s15_s7, [#allocation3]  }
  0x11   :  { %225 = dma.done.wait [#allocation3], 128  }
  0x12   :  { %226 = vsyncadd [#allocation3], 4294967168  ;;  %v28_v0 = vlaneseq  ;;  %v230_v1 = vmov 1966171168   ;;  %v23_v6 = vld [vmem:[#allocation2] sm:$0xff]  ;;  %v231_v36 = vmov 0  }
  0x13   :  { %v26_v2 = vunpack.c.l.s4 %v230_v1  ;;  %v24_v8 = vcombine.high %v23_v6, %v23_v6  ;;  %s232_s0 = smov [#allocation5]  }
  0x14   :  { %v29_v3 = vshrl.u32 %v28_v0, 7  ;;  %s167_s18 = sshll.u32 %s232_s0, 4  ;;  %s168_s18 = int_to_ptr.vmem [resolvable:$true] %s167_s18 }
  0x15   :  { %v27_v4 = vunpack.c.0.s8 %v26_v2  ;;  %s203_s19 = scalar_lea.vmem %s168_s18, 256  ;;  %p208_p9 = scmp.lt.s32.totalorder %s168_s18, %s168_s18 }
  0x16   :  { %v78_v12 = vsub.s32 0, %v29_v3  ;;  %p204_p8 = scmp.ne.s32.totalorder %s168_s18, %s203_s19  ;;  %p209_p10 = scmp.lt.s32.totalorder %s203_s19, %s203_s19 }
  0x17   :  { %v30_v5 = vsub.s32 %v27_v4, %v29_v3 }
  0x18   :  { %p210_p11 = por %p209_p10, %p208_p9 }
  0x19   :  { %v31_v7 = vrot.slane %v23_v6, %v30_v5  ;;  %v38_v11 = vrot.slane %v24_v8, %v30_v5 }
  0x1a   :  { %p211_p12 = pnand %p210_p11, %p204_p8 }
  0x1b   :  { %v39_v9 = vcombine.high %v31_v7, %v31_v7  ;;  %v47_v10 = vrot.slane %v31_v7, %v30_v5  ;;  %v40_v16 = vcombine.high %v38_v11, %v38_v11  ;;  %v54_v17 = vrot.slane %v38_v11, %v30_v5 }
  0x1d   :  { %v61_v13 = vrot.slane %v39_v9, %v30_v5  ;;  %v69_v14 = vcombine.high %v47_v10, %v47_v10  ;;  %v74_v15 = vpack.i.b16 %v47_v10, %v47_v10  ;;  %v68_v22 = vrot.slane %v40_v16, %v30_v5 }
  0x1e   :  { %v70_v23 = vcombine.high %v54_v17, %v54_v17  ;;  %v102_v24 = vpack.i.b16 %v54_v17, %v54_v17 }
  0x1f   :  { %v71_v18 = vcombine.high %v61_v13, %v61_v13  ;;  %v75_v19 = vpack.i.b8 %v74_v15, %v74_v15  ;;  %v81_v20 = vpack.i.b16 %v61_v13, %v61_v13  ;;  %v88_v21 = vpack.i.b16 %v69_v14, %v69_v14 }
  0x20   :  { %v72_v29 = vcombine.high %v68_v22, %v68_v22  ;;  %v103_v30 = vpack.i.b8 %v102_v24, %v102_v24  ;;  %v109_v31 = vpack.i.b16 %v68_v22, %v68_v22  ;;  %v116_v32 = vpack.i.b16 %v70_v23, %v70_v23 }
  0x21   :  { %v79_v25 = vrot.slane %v75_v19, %v78_v12  ;;  %v82_v26 = vpack.i.b8 %v81_v20, %v81_v20  ;;  %v89_v27 = vpack.i.b8 %v88_v21, %v88_v21  ;;  %v95_v28 = vpack.i.b16 %v71_v18, %v71_v18 }
  0x22   :  { %v107_v38 = vrot.slane %v103_v30, %v78_v12  ;;  %v110_v39 = vpack.i.b8 %v109_v31, %v109_v31  ;;  %v117_v40 = vpack.i.b8 %v116_v32, %v116_v32  ;;  %v123_v49 = vpack.i.b16 %v72_v29, %v72_v29 }
  0x23   :  { %v86_v33 = vrot.slane %v82_v26, %v78_v12  ;;  %v93_v34 = vrot.slane %v89_v27, %v78_v12  ;;  %v96_v35 = vpack.i.b8 %v95_v28, %v95_v28  ;;  %vm129_vm0 = vnez %v79_v25 }
  0x24   :  { %v137_v37 = vsel %vm129_vm0, 16843009, %v231_v36  ;;  %v114_v45 = vrot.slane %v110_v39, %v78_v12  ;;  %v121_v46 = vrot.slane %v117_v40, %v78_v12  ;;  %vm133_vm4 = vnez %v107_v38 }
  0x25   :  { %v100_v41 = vrot.slane %v96_v35, %v78_v12  ;;  %vm130_vm1 = vnez %v86_v33  ;;  %vm131_vm2 = vnez %v93_v34  ;;  %v145_v42 = vunpack.c.0.s8 %v137_v37 }
  0x26   :  { %v138_v43 = vsel %vm130_vm1, 16843009, %v231_v36  ;;  %v139_v44 = vsel %vm131_vm2, 16843009, %v231_v36  ;;  %vm134_vm5 = vnez %v114_v45  ;;  %vm135_vm6 = vnez %v121_v46 }
  0x27   :  { %vm132_vm3 = vnez %v100_v41  ;;  %v146_v47 = vunpack.c.0.s8 %v138_v43  ;;  %v147_v48 = vunpack.c.0.s8 %v139_v44  ;;  %v124_v53 = vpack.i.b8 %v123_v49, %v123_v49 }
  0x28   :  { %v140_v50 = vsel %vm132_vm3, 16843009, %v231_v36  ;;  %v141_v54 = vsel %vm133_vm4, 16843009, %v231_v36  ;;  %v142_v55 = vsel %vm134_vm5, 16843009, %v231_v36 }
  0x29   :  { %v148_v51 = vunpack.c.0.s8 %v140_v50  ;;  %v153_v52 = vpack.c.b16 %v146_v47, %v145_v42  ;;  %v143_v56 = vsel %vm135_vm6, 16843009, %v231_v36  ;;  %v128_v58 = vrot.slane %v124_v53, %v78_v12 }
  0x2a   :  { %v149_v59 = vunpack.c.0.s8 %v141_v54  ;;  %v150_v60 = vunpack.c.0.s8 %v142_v55  ;;  %v151_v62 = vunpack.c.0.s8 %v143_v56 }
  0x2b   :  { %v154_v57 = vpack.c.b16 %v148_v51, %v147_v48  ;;  %vm136_vm7 = vnez %v128_v58 }
  0x2c   :  { %v144_v63 = vsel %vm136_vm7, 16843009, %v231_v36  ;;  %v156_v1 = vpack.c.b16 %v150_v60, %v149_v59 }
  0x2d   :  { %v155_v61 = vpack.c.b8 %v154_v57, %v153_v52  ;;  %v152_v0 = vunpack.c.0.s8 %v144_v63 }
  0x2f   :  { %159 = vst [vmem:[#allocation5] sm:$0xff] %v155_v61  ;;  %v157_v2 = vpack.c.b16 %v152_v0, %v151_v62 }
  0x31   :  { %v158_v3 = vpack.c.b8 %v157_v2, %v156_v1 }
  0x33   :  { %160 = vst [vmem:[#allocation5 + $0x8] sm:$0xff] %v158_v3 }
  0x34   :  { %214 = shalt.err (!%p211_p12)
}
  0x35   :  { %s215_s22 = scalar_lea.hbm %s268_s1, 256 }
  0x36   :  { %p216_p13 = scmp.ne.s32.totalorder %s268_s1, %s215_s22  ;;  %p219_p0 = scmp.lt.u32.totalorder %s215_s22, %s268_s1 }
  0x38   :  { %p221_p1 = pnand %p219_p0, %p216_p13 }
  0x3a   :  { %224 = shalt.err (!%p221_p1)
}
  0x3b   :  { %170 = dma.vmem_to_hbm [thread:$0]  %s168_s18, 256, %s268_s1, [#allocation4]  }
  0x3c   :  { %227 = dma.done.wait [#allocation4], 256  }
  0x3d   :  { %228 = vsyncadd [#allocation4], 4294967040 }
  0x3e   :  { %174 = vsyncpa [#allocation3], 1 }
  0x3f   :  { %175 = vsyncpa [#allocation4], 1 }

</bundles_post_ra>
